<compile_context>
chip_gen: v5e
topology: v5e:2x2
jax: 0.10.0
libtpu: 0.0.40
codegen_flags: <defaults>
</compile_context>

<pallas_src>
import math

import jax
import jax.numpy as jnp
from jax.experimental import pallas as pl
from jax.experimental.pallas import tpu as pltpu


LN_EPS = 1e-5


def _patch_merge_kernel(xe_ref, xo_ref, we_ref, wo_ref, gw_ref, bias_ref, o_ref):
    """Fused 2x2 patch-merge + LayerNorm(4C) + Linear(4C -> C2o, no bias).

    xe_ref:   (tg, W2, 2C)   even input rows; last axis packs (col parity, C).
    xo_ref:   (tg, W2, 2C)   odd  input rows.
    we_ref:   (2C, C2o)      gamma-folded weight rows for even input rows.
    wo_ref:   (2C, C2o)      gamma-folded weight rows for odd input rows.
    gw_ref:   (1, C2o)       gamma @ W^T  (f32)
    bias_ref: (1, C2o)       beta  @ W^T  (f32)
    o_ref:    (tg*W2, C2o)   output rows ordered (group, col-pair).
    """
    tg, w2, c2 = xe_ref.shape               # c2 == 2*C
    rows = tg * w2

    # Collapse (tg, W2, 2C) -> (tg*W2, 2C) for the MXU.  A free view whenever
    # W2 is sublane-aligned (as in this test); once Mosaic supports a
    # rank-3 x rank-2 dot_general natively this collapse (and the 2-D output
    # block) can be dropped to stay 3-D end to end.
    xe = xe_ref[...].reshape(rows, c2)
    xo = xo_ref[...].reshape(rows, c2)

    # One-pass LayerNorm statistics over the full 4C group, in f32.
    # (Sums are permutation-invariant, so the even/odd split is irrelevant.)
    ef = xe.astype(jnp.float32)
    of = xo.astype(jnp.float32)
    inv_n = 1.0 / float(2 * c2)              # 1 / (4C)
    mean = (jnp.sum(ef, axis=-1, keepdims=True)
            + jnp.sum(of, axis=-1, keepdims=True)) * inv_n
    ex2 = (jnp.sum(ef * ef, axis=-1, keepdims=True)
           + jnp.sum(of * of, axis=-1, keepdims=True)) * inv_n
    var = jnp.maximum(ex2 - mean * mean, 0.0)   # clamp: f32 cancellation safety
    inv = jax.lax.rsqrt(var + LN_EPS)

    # merged @ (gamma * W^T) == xe @ We + xo @ Wo.
    # Operands in the weight dtype (bf16 inputs stay bf16; the optional
    # f32 -> bf16 cast is decided by the wrapper), f32 accumulation.  Keep the
    # two dots adjacent as one accumulate (MRB-friendly on v7x).
    md = we_ref.dtype
    acc = jnp.dot(xe.astype(md), we_ref[...], preferred_element_type=jnp.float32)
    acc = acc + jnp.dot(xo.astype(md), wo_ref[...], preferred_element_type=jnp.float32)

    # normed @ W^T == inv*(X @ Wg) - (inv*mean)*(gamma @ W^T) + beta @ W^T
    out = inv * acc - (inv * mean) * gw_ref[...] + bias_ref[...]
    o_ref[...] = out.astype(o_ref.dtype)


def _chip_params():
    """Chip-aware (vmem_budget, vmem_limit_cap, target_rows, multicore)."""
    vmem_cap = 64 * 1024 * 1024
    try:
        info = pltpu.get_tpu_info()
        vmem_cap = int(getattr(info, "vmem_capacity_bytes", vmem_cap))
    except Exception:
        # Not queryable: assume the tightest chip (v7x-like) — conservative.
        pass
    if vmem_cap < 100 * 1024 * 1024:
        # v7x-class: 64 MiB VMEM per TensorCore, 2 TensorCores per chip.
        return 24 * 1024 * 1024, 48 * 1024 * 1024, 1024, True
    # v5e / v6e: 128 MiB VMEM, single TensorCore (grid is a serial loop).
    return 56 * 1024 * 1024, 96 * 1024 * 1024, 4096, False


def _fused_norm_reduction(xg, we, wo, gw, bias, out_dtype, *, target_rows=None):
    """xg: (G, 2, W2, 2C) -> (G*W2, C2o), tiled over row-pair groups."""
    G, _parity, W2, C2 = xg.shape
    C2o = we.shape[1]                        # already lane-padded by the caller
    M = G * W2

    budget, limit_cap, default_rows, multicore = _chip_params()
    if target_rows is None:
        target_rows = default_rows

    in_item = jnp.dtype(xg.dtype).itemsize
    out_item = jnp.dtype(out_dtype).itemsize
    w_item = jnp.dtype(we.dtype).itemsize

    # Every BlockSpec input is double-buffered by the pipeline, INCLUDING the
    # resident we/wo weights (a constant index_map skips the re-DMA, not the
    # second buffer), so count them twice.  (pipeline_mode=pl.Buffered(1) on
    # the weight specs is a sweepable alternative.)
    w_bytes = 2 * (2 * C2 * C2o * w_item + 2 * C2o * 4)

    def vmem_footprint(t):
        in_b = t * 2 * W2 * C2 * in_item     # xe + xo tiles
        out_b = t * W2 * C2o * out_item
        return 2 * (in_b + out_b) + w_bytes

    # Output rows per tile (tg*W2) must be a multiple of the sublane packing
    # for the OUTPUT dtype (8 f32 / 16 bf16 / 32 int8) unless one tile covers M.
    sub = {4: 8, 2: 16, 1: 32}.get(out_item, 8)
    q = sub // math.gcd(W2, sub)

    def aligned(t):
        if t >= G:
            return G                         # full extent: exempt from alignment
        return min(G, max(q, (t // q) * q))

    tg = aligned(max(1, target_rows // max(W2, 1)))
    if multicore and G >= 4:
        # 2 TensorCores share the "parallel" grid axis: aim for an even number
        # of >= 4 steps so a ragged tail never idles a whole core.
        steps = max(4, pl.cdiv(G, tg))
        if steps % 2:
            steps += 1
        tg = aligned(pl.cdiv(G, steps))
    # Shrink to the chip-aware VMEM budget (double-buffered tiles + weights).
    while vmem_footprint(tg) > budget and tg > q:
        nt = aligned(max(q, tg // 2))
        if nt == tg:
            break
        tg = nt

    rows = tg * W2
    grid = pl.cdiv(G, tg)
    vmem_limit = int(min(limit_cap, max(32 * 1024 * 1024, 2 * vmem_footprint(tg))))

    return pl.pallas_call(
        _patch_merge_kernel,
        out_shape=jax.ShapeDtypeStruct((M, C2o), out_dtype),
        grid_spec=pltpu.PrefetchScalarGridSpec(
            num_scalar_prefetch=0,
            grid=(grid,),
            in_specs=[
                # xg is passed twice; the Squeezed parity axis makes the DMA do
                # the 2x2 row gather, so the kernel sees clean 3-D slabs and
                # never materializes the 4-D tile as a value.
                pl.BlockSpec((tg, pl.Squeezed(), W2, C2), lambda i: (i, 0, 0, 0)),
                pl.BlockSpec((tg, pl.Squeezed(), W2, C2), lambda i: (i, 1, 0, 0)),
                pl.BlockSpec((C2, C2o), lambda i: (0, 0)),
                pl.BlockSpec((C2, C2o), lambda i: (0, 0)),
                pl.BlockSpec((1, C2o), lambda i: (0, 0)),
                pl.BlockSpec((1, C2o), lambda i: (0, 0)),
            ],
            out_specs=pl.BlockSpec((rows, C2o), lambda i: (i, 0)),
        ),
        compiler_params=pltpu.CompilerParams(
            dimension_semantics=("parallel",),
            vmem_limit_bytes=vmem_limit,
        ),
    )(xg, xg, we, wo, gw, bias)


def patch_merging_forward(x, H, W, params, *, target_rows=None,
                          matmul_in_bf16=False, pad_out_to_lanes=None):
    """JAX/Pallas equivalent of PatchMerging.forward.

    x: (B, H*W, C)
    params: 'reduction_w' (2C, 4C) torch nn.Linear layout,
            'norm_gamma' (4C,), 'norm_beta' (4C,)
    returns (B, ceil(H/2)*ceil(W/2), 2C)
    """
    B, L, C = x.shape
    assert L == H * W, "input feature has wrong size"

    x = x.reshape(B, H, W, C)
    pad_h, pad_w = H % 2, W % 2
    if pad_h or pad_w:                       # zero-pad bottom/right like F.pad
        x = jnp.pad(x, ((0, 0), (0, pad_h), (0, pad_w), (0, 0)))
    Hp, Wp = H + pad_h, W + pad_w
    H2, W2 = Hp // 2, Wp // 2

    # Free row-major reshape: (B, Hp, Wp, C) -> (B*H2, 2, W2, 2C).
    # axis1 = input-row parity, last axis packs (input-col parity, C).
    xg = x.reshape(B * H2, 2, W2, 2 * C)

    # Fold LayerNorm gamma into the reduction weight and beta into an additive
    # bias, then split the gamma-folded weight into even/odd-input-row halves
    # matching xg's (col-parity, C) feature packing.
    # torch concat order: [x0, x1, x2, x3] = [(h0,w0), (h1,w0), (h0,w1), (h1,w1)]
    w_t = params["reduction_w"].astype(jnp.float32).T           # (4C, C2o)
    gamma = params["norm_gamma"].astype(jnp.float32)
    beta = params["norm_beta"].astype(jnp.float32)
    C2o = w_t.shape[1]
    wg = gamma[:, None] * w_t
    we = jnp.concatenate([wg[0:C], wg[2 * C:3 * C]], axis=0)    # even input rows
    wo = jnp.concatenate([wg[C:2 * C], wg[3 * C:4 * C]], axis=0)  # odd input rows
    gw = (gamma @ w_t)[None, :]                                  # (1, C2o) f32
    bias = (beta @ w_t)[None, :]                                 # (1, C2o) f32

    # Optionally pad the output-channel dim to a multiple of 128 so stores are
    # lane-dense and the MXU N dimension fills cleanly.  Auto-on when
    # C2o < 128 (clear win); sweepable otherwise (costs extra output bytes).
    if pad_out_to_lanes is None:
        pad_out_to_lanes = (C2o % 128 != 0) and (C2o < 128)
    C2o_p = C2o
    if pad_out_to_lanes and C2o % 128 != 0:
        C2o_p = ((C2o + 127) // 128) * 128
        padn = C2o_p - C2o
        we = jnp.pad(we, ((0, 0), (0, padn)))
        wo = jnp.pad(wo, ((0, 0), (0, padn)))
        gw = jnp.pad(gw, ((0, 0), (0, padn)))
        bias = jnp.pad(bias, ((0, 0), (0, padn)))

    # bf16 inputs keep bf16 weights; f32 inputs can opt into bf16 MXU dots
    # (LayerNorm stats and the epilogue stay f32) via matmul_in_bf16.
    mm_dtype = jnp.bfloat16 if (matmul_in_bf16 and x.dtype == jnp.float32) else x.dtype
    we = we.astype(mm_dtype)
    wo = wo.astype(mm_dtype)

    out2d = _fused_norm_reduction(xg, we, wo, gw, bias, out_dtype=x.dtype,
                                  target_rows=target_rows)
    if C2o_p != C2o:
        out2d = out2d[:, :C2o]
    return out2d.reshape(B, H2 * W2, C2o)


def _reference_forward(x, H, W, params):
    """Plain-JAX reference mirroring the PyTorch module, for verification."""
    B, L, C = x.shape
    x = x.reshape(B, H, W, C)
    pad_h, pad_w = H % 2, W % 2
    if pad_h or pad_w:
        x = jnp.pad(x, ((0, 0), (0, pad_h), (0, pad_w), (0, 0)))
    x0 = x[:, 0::2, 0::2, :]
    x1 = x[:, 1::2, 0::2, :]
    x2 = x[:, 0::2, 1::2, :]
    x3 = x[:, 1::2, 1::2, :]
    x = jnp.concatenate([x0, x1, x2, x3], axis=-1).reshape(B, -1, 4 * C)
    x = x.astype(jnp.float32)
    mean = jnp.mean(x, axis=-1, keepdims=True)
    var = jnp.mean((x - mean) ** 2, axis=-1, keepdims=True)
    x = (x - mean) / jnp.sqrt(var + LN_EPS)
    x = x * params["norm_gamma"].astype(jnp.float32) + params["norm_beta"].astype(jnp.float32)
    return x @ params["reduction_w"].astype(jnp.float32).T


if __name__ == "__main__":
    key = jax.random.PRNGKey(0)
    k_x, k_w, k_g, k_b = jax.random.split(key, 4)

    # Small shapes consistent with the module: dim (C) = 32, H = W = 16, B = 2.
    B, H, W, C = 2, 16, 16, 32
    x = jax.random.normal(k_x, (B, H * W, C), dtype=jnp.float32)

    # Deterministic synthetic parameters.
    # nn.Linear(4*dim, 2*dim, bias=False) -> weight (2C, 4C)
    # nn.LayerNorm(4*dim)                 -> gamma/beta (4C,)
    params = {
        "reduction_w": jax.random.normal(k_w, (2 * C, 4 * C), dtype=jnp.float32) * 0.02,
        "norm_gamma": 1.0 + 0.1 * jax.random.normal(k_g, (4 * C,), dtype=jnp.float32),
        "norm_beta": 0.1 * jax.random.normal(k_b, (4 * C,), dtype=jnp.float32),
    }

    fwd = jax.jit(patch_merging_forward, static_argnums=(1, 2))
    out = jax.block_until_ready(fwd(x, H, W, params))

    ref = _reference_forward(x, H, W, params)
    assert out.shape == (B, (H // 2) * (W // 2), 2 * C), out.shape
    # f32 run: only reassociation-level differences vs. the reference.
    assert jnp.allclose(out, ref, atol=1e-3, rtol=1e-3), "mismatch vs reference"

    print("KERNEL_OK")
</pallas_src>

<mosaic_0001>
module attributes {stable_mosaic.version = 11 : i64} {
  func.func @_patch_merge_kernel(%arg0: i32, %arg1: memref<4x1x8x64xf32, #tpu.memory_space<vmem>>, %arg2: memref<4x1x8x64xf32, #tpu.memory_space<vmem>>, %arg3: memref<64x128xf32, #tpu.memory_space<vmem>>, %arg4: memref<64x128xf32, #tpu.memory_space<vmem>>, %arg5: memref<1x128xf32, #tpu.memory_space<vmem>>, %arg6: memref<1x128xf32, #tpu.memory_space<vmem>>, %arg7: memref<32x128xf32, #tpu.memory_space<vmem>>) attributes {dimension_semantics = [#tpu.dimension_semantics<parallel>], iteration_bounds = array<i64: 4>, scalar_prefetch = 0 : i64, scratch_operands = 0 : i64, tpu.core_type = #tpu.core_type<tc>, window_params = [{transform_indices = @transform_0, window_bounds = array<i64: 4, 1, 8, 64>}, {transform_indices = @transform_1, window_bounds = array<i64: 4, 1, 8, 64>}, {pipeline_mode = #tpu.pipeline_mode<synchronous>, transform_indices = @transform_2, window_bounds = array<i64: 64, 128>}, {pipeline_mode = #tpu.pipeline_mode<synchronous>, transform_indices = @transform_3, window_bounds = array<i64: 64, 128>}, {pipeline_mode = #tpu.pipeline_mode<synchronous>, transform_indices = @transform_4, window_bounds = array<i64: 1, 128>}, {pipeline_mode = #tpu.pipeline_mode<synchronous>, transform_indices = @transform_5, window_bounds = array<i64: 1, 128>}, {transform_indices = @transform_6, window_bounds = array<i64: 32, 128>}]} {
    %c0 = arith.constant 0 : index
    %c0_0 = arith.constant 0 : index
    %c0_1 = arith.constant 0 : index
    %c0_2 = arith.constant 0 : index
    %0 = vector.load %arg1[%c0, %c0_0, %c0_1, %c0_2] : memref<4x1x8x64xf32, #tpu.memory_space<vmem>>, vector<4x1x8x64xf32>
    %1 = vector.shape_cast %0 : vector<4x1x8x64xf32> to vector<4x8x64xf32>
    %2 = vector.shape_cast %1 : vector<4x8x64xf32> to vector<32x64xf32>
    %c0_3 = arith.constant 0 : index
    %c0_4 = arith.constant 0 : index
    %c0_5 = arith.constant 0 : index
    %c0_6 = arith.constant 0 : index
    %3 = vector.load %arg2[%c0_3, %c0_4, %c0_5, %c0_6] : memref<4x1x8x64xf32, #tpu.memory_space<vmem>>, vector<4x1x8x64xf32>
    %4 = vector.shape_cast %3 : vector<4x1x8x64xf32> to vector<4x8x64xf32>
    %5 = vector.shape_cast %4 : vector<4x8x64xf32> to vector<32x64xf32>
    %cst = arith.constant dense<0.000000e+00> : vector<32xf32>
    %6 = vector.multi_reduction <add>, %2, %cst [1] : vector<32x64xf32> to vector<32xf32>
    %7 = vector.shape_cast %6 : vector<32xf32> to vector<32x1xf32>
    %cst_7 = arith.constant dense<0.000000e+00> : vector<32xf32>
    %8 = vector.multi_reduction <add>, %5, %cst_7 [1] : vector<32x64xf32> to vector<32xf32>
    %9 = vector.shape_cast %8 : vector<32xf32> to vector<32x1xf32>
    %10 = arith.addf %7, %9 : vector<32x1xf32>
    %cst_8 = arith.constant 7.812500e-03 : f32
    %11 = vector.broadcast %cst_8 : f32 to vector<32x1xf32>
    %12 = arith.mulf %10, %11 : vector<32x1xf32>
    %13 = arith.mulf %2, %2 : vector<32x64xf32>
    %cst_9 = arith.constant dense<0.000000e+00> : vector<32xf32>
    %14 = vector.multi_reduction <add>, %13, %cst_9 [1] : vector<32x64xf32> to vector<32xf32>
    %15 = vector.shape_cast %14 : vector<32xf32> to vector<32x1xf32>
    %16 = arith.mulf %5, %5 : vector<32x64xf32>
    %cst_10 = arith.constant dense<0.000000e+00> : vector<32xf32>
    %17 = vector.multi_reduction <add>, %16, %cst_10 [1] : vector<32x64xf32> to vector<32xf32>
    %18 = vector.shape_cast %17 : vector<32xf32> to vector<32x1xf32>
    %19 = arith.addf %15, %18 : vector<32x1xf32>
    %cst_11 = arith.constant 7.812500e-03 : f32
    %20 = vector.broadcast %cst_11 : f32 to vector<32x1xf32>
    %21 = arith.mulf %19, %20 : vector<32x1xf32>
    %22 = arith.mulf %12, %12 : vector<32x1xf32>
    %23 = arith.subf %21, %22 : vector<32x1xf32>
    %cst_12 = arith.constant 0.000000e+00 : f32
    %24 = vector.broadcast %cst_12 : f32 to vector<32x1xf32>
    %25 = arith.maximumf %23, %24 : vector<32x1xf32>
    %cst_13 = arith.constant 9.99999974E-6 : f32
    %26 = vector.broadcast %cst_13 : f32 to vector<32x1xf32>
    %27 = arith.addf %25, %26 : vector<32x1xf32>
    %28 = math.rsqrt %27 : vector<32x1xf32>
    %c0_14 = arith.constant 0 : index
    %c0_15 = arith.constant 0 : index
    %29 = vector.load %arg3[%c0_14, %c0_15] : memref<64x128xf32, #tpu.memory_space<vmem>>, vector<64x128xf32>
    %cst_16 = arith.constant dense<0.000000e+00> : vector<32x128xf32>
    %30 = tpu.matmul %2, %29, %cst_16 {dimension_numbers = #tpu.dot_dimension_numbers<[1], [0], [0], [1], [0, 0, 1, 1], [], []>} : vector<32x64xf32>, vector<64x128xf32>, vector<32x128xf32> -> vector<32x128xf32>
    %c0_17 = arith.constant 0 : index
    %c0_18 = arith.constant 0 : index
    %31 = vector.load %arg4[%c0_17, %c0_18] : memref<64x128xf32, #tpu.memory_space<vmem>>, vector<64x128xf32>
    %cst_19 = arith.constant dense<0.000000e+00> : vector<32x128xf32>
    %32 = tpu.matmul %5, %31, %cst_19 {dimension_numbers = #tpu.dot_dimension_numbers<[1], [0], [0], [1], [0, 0, 1, 1], [], []>} : vector<32x64xf32>, vector<64x128xf32>, vector<32x128xf32> -> vector<32x128xf32>
    %33 = arith.addf %30, %32 : vector<32x128xf32>
    %34 = vector.broadcast %28 : vector<32x1xf32> to vector<32x128xf32>
    %35 = arith.mulf %34, %33 : vector<32x128xf32>
    %36 = arith.mulf %28, %12 : vector<32x1xf32>
    %c0_20 = arith.constant 0 : index
    %c0_21 = arith.constant 0 : index
    %37 = vector.load %arg5[%c0_20, %c0_21] : memref<1x128xf32, #tpu.memory_space<vmem>>, vector<1x128xf32>
    %38 = vector.broadcast %36 : vector<32x1xf32> to vector<32x128xf32>
    %39 = vector.broadcast %37 : vector<1x128xf32> to vector<32x128xf32>
    %40 = arith.mulf %38, %39 : vector<32x128xf32>
    %41 = arith.subf %35, %40 : vector<32x128xf32>
    %c0_22 = arith.constant 0 : index
    %c0_23 = arith.constant 0 : index
    %42 = vector.load %arg6[%c0_22, %c0_23] : memref<1x128xf32, #tpu.memory_space<vmem>>, vector<1x128xf32>
    %43 = vector.broadcast %42 : vector<1x128xf32> to vector<32x128xf32>
    %44 = arith.addf %41, %43 : vector<32x128xf32>
    %c0_24 = arith.constant 0 : index
    %c0_25 = arith.constant 0 : index
    %45 = vector.load %arg7[%c0_24, %c0_25] : memref<32x128xf32, #tpu.memory_space<vmem>>, vector<32x128xf32>
    tpu.vector_store %arg7[%c0_24, %c0_25], %44 {strides = array<i32>} : memref<32x128xf32, #tpu.memory_space<vmem>>, vector<32x128xf32>,
    return
  }
  func.func @transform_0(%arg0: i32) -> (i32, i32, i32, i32) {
    %c0_i32 = arith.constant 0 : i32
    %c0_i32_0 = arith.constant 0 : i32
    %c0_i32_1 = arith.constant 0 : i32
    %c0_i32_2 = arith.constant 0 : i32
    return %arg0, %c0_i32, %c0_i32_0, %c0_i32_1 : i32, i32, i32, i32
  }
  func.func @transform_1(%arg0: i32) -> (i32, i32, i32, i32) {
    %c1_i32 = arith.constant 1 : i32
    %c0_i32 = arith.constant 0 : i32
    %c0_i32_0 = arith.constant 0 : i32
    %c0_i32_1 = arith.constant 0 : i32
    return %arg0, %c1_i32, %c0_i32, %c0_i32_0 : i32, i32, i32, i32
  }
  func.func @transform_2(%arg0: i32) -> (i32, i32) {
    %c0_i32 = arith.constant 0 : i32
    %c0_i32_0 = arith.constant 0 : i32
    %c0_i32_1 = arith.constant 0 : i32
    return %c0_i32, %c0_i32_0 : i32, i32
  }
  func.func @transform_3(%arg0: i32) -> (i32, i32) {
    %c0_i32 = arith.constant 0 : i32
    %c0_i32_0 = arith.constant 0 : i32
    %c0_i32_1 = arith.constant 0 : i32
    return %c0_i32, %c0_i32_0 : i32, i32
  }
  func.func @transform_4(%arg0: i32) -> (i32, i32) {
    %c0_i32 = arith.constant 0 : i32
    %c0_i32_0 = arith.constant 0 : i32
    %c0_i32_1 = arith.constant 0 : i32
    return %c0_i32, %c0_i32_0 : i32, i32
  }
  func.func @transform_5(%arg0: i32) -> (i32, i32) {
    %c0_i32 = arith.constant 0 : i32
    %c0_i32_0 = arith.constant 0 : i32
    %c0_i32_1 = arith.constant 0 : i32
    return %c0_i32, %c0_i32_0 : i32, i32
  }
  func.func @transform_6(%arg0: i32) -> (i32, i32) {
    %c0_i32 = arith.constant 0 : i32
    %c0_i32_0 = arith.constant 0 : i32
    return %arg0, %c0_i32 : i32, i32
  }
}

</mosaic_0001>

<bundles_post_ra>
// kernel: patch_merging_forward.1
= control target key start
LH: loop header
LB: loop body
LE: loop exit
PB: predicated region body
PF: predicated region fallthrough
CT: control target
= control target key end

     0   :  { %11 = vsyncpa [#allocation5], 0  ;;  %s1190_s0 = inlined_call_operand.vmem [shape: f32[16,2,8,64], index: 0, kind: input, shape index: {}, may-alias: {0,1}]   ;;  %s1191_s1 = inlined_call_operand.vmem [shape: f32[16,2,8,64], index: 1, kind: input, shape index: {}, may-alias: {0,1}]   ;;  %s1192_s2 = inlined_call_operand.vmem [shape: f32[64,128], index: 2, kind: input, shape index: {}]   ;;  %s1193_s3 = inlined_call_operand.vmem [shape: f32[64,128], index: 3, kind: input, shape index: {}]   ;;  %s1194_s4 = inlined_call_operand.vmem [shape: f32[1,128], index: 4, kind: input, shape index: {}]   ;;  %s1195_s5 = inlined_call_operand.vmem [shape: f32[1,128], index: 5, kind: input, shape index: {}]   ;;  %s1196_s6 = inlined_call_operand.hbm [shape: f32[128,128], index: 6, kind: output, shape index: {}]  }
   0x1   :  { %13 = vsyncpa [#allocation5 + $0x1], 0  ;;  %s946_s21 = smov 0   ;;  %s948_s22 = smov 0  }
   0x2   :  { %s950_s23 = smov 0   ;;  %s952_s24 = smov 0  }
   0x3 LB: > { %s742_s25 = sadd.s32 4294967295, %s907_s24   ;;  %s743_s26 = sadd.s32 4294967294, %s907_s24   ;;  %s907_s24 = sphi %s952_s24, %s1203_s24   ;;  %s903_s23 = sphi %s950_s23, %s1202_s23   ;;  %s899_s22 = sphi %s948_s22, %s1201_s22   ;;  %s895_s21 = sphi %s946_s21, %s1200_s21  }
   0x4   : > { %s969_s27 = sadd.s32 1, %s907_s24   ;;  %s26_s28 = sadd.s32 1, %s903_s23 }
   0x5   : > { %s23_s29 = ssub.s32 %s907_s24, %s969_s27  ;;  %p33_p0 = scmp.ne.s32.totalorder %s903_s23, %s899_s22 }
   0x6   : > { %p24_p1 = scmp.eq.s32.totalorder %s23_s29, 0  ;;  %p34_p2 = scmp.eq.s32.totalorder %s907_s24, 0 }
   0x7   : > { %p173_p3 = scmp.eq.s32.totalorder %s742_s25, 3  ;;  %p178_p4 = scmp.ne.s32.totalorder %s899_s22, %s895_s21 }
   0x8   : > { %s982_s30 = scalar_select %p24_p1, %s903_s23, %s26_s28  }
   0x9   : > { %p984_p5 = por %p34_p2, %p33_p0  ;;  %p988_p6 = por %p173_p3, %p33_p0 }
   0xa   : > { %p179_p7 = scmp.eq.s32.totalorder %s743_s26, 3  ;;  %p745_p9 = scmp.ge.s32.totalorder %s907_s24, 4 }
   0xc   : > { %p992_p8 = por %p179_p7, %p178_p4  ;;  %207 = sbr.rel (%p745_p9) target bundleno = 33 (0x21), region = 32 }
  0x11   : > { %210 = sbr.rel (!%p984_p5) target bundleno = 25 (0x19), region = 36  ;;  %s212_s10 = sand.u32 (%p984_p5), 1, %s903_s23  }
  0x12   : > { %s775_s11 = sshll.u32 (%p984_p5), %s907_s24, 6  ;;  %s746_s12 = sshll.u32 (%p984_p5), %s212_s10, 5 }
  0x13   : > { %s218_s15 = scalar_lea.vmem (%p984_p5), %s1190_s0, %s775_s11  ;;  %s214_s16 = scalar_lea.vmem (%p984_p5), [#allocation2], %s746_s12 }
  0x14   : > { %v253_v0 = vld [vmem:[%s218_s15] sm:$0xff] (%p984_p5)  ;;  %v255_v1 = vld [vmem:[%s218_s15 + $0x10] sm:$0xff] (%p984_p5) }
  0x15   : > { %v257_v2 = vld [vmem:[%s218_s15 + $0x20] sm:$0xff] (%p984_p5)  ;;  %254 = vst [vmem:[%s214_s16] sm:$0xff] (%p984_p5), %v253_v0  ;;  %v259_v3 = vld [vmem:[%s218_s15 + $0x30] sm:$0xff] (%p984_p5) }
  0x16   : > { %256 = vst [vmem:[%s214_s16 + $0x8] sm:$0xff] %v255_v1 }
  0x17   : > { %258 = vst [vmem:[%s214_s16 + $0x10] sm:$0xff] %v257_v2 }
  0x18   : > { %260 = vst [vmem:[%s214_s16 + $0x18] sm:$0xff] %v259_v3 }
  0x19 PF: > { %266 = sbr.rel (!%p984_p5) target bundleno = 33 (0x21), region = 74  ;;  %s268_s17 = sand.u32 (%p984_p5), 1, %s903_s23  }
  0x1a   : > { %s776_s18 = sshll.u32 (%p984_p5), %s907_s24, 6  ;;  %s750_s19 = sshll.u32 (%p984_p5), %s268_s17, 5 }
  0x1b   : > { %s687_s28 = scalar_lea.vmem (%p984_p5), %s1191_s1, %s776_s18  ;;  %s270_s29 = scalar_lea.vmem (%p984_p5), [#allocation3], %s750_s19 }
  0x1c   : > { %v753_v4 = vld [vmem:[%s687_s28 + $0x8] sm:$0xff] (%p984_p5)  ;;  %v754_v5 = vld [vmem:[%s687_s28 + $0x18] sm:$0xff] (%p984_p5) }
  0x1d   : > { %v755_v6 = vld [vmem:[%s687_s28 + $0x28] sm:$0xff] (%p984_p5)  ;;  %311 = vst [vmem:[%s270_s29] sm:$0xff] (%p984_p5), %v753_v4  ;;  %v756_v7 = vld [vmem:[%s687_s28 + $0x38] sm:$0xff] (%p984_p5) }
  0x1e   : > { %313 = vst [vmem:[%s270_s29 + $0x8] sm:$0xff] %v754_v5 }
  0x1f   : > { %315 = vst [vmem:[%s270_s29 + $0x10] sm:$0xff] %v755_v6 }
  0x20   : > { %317 = vst [vmem:[%s270_s29 + $0x18] sm:$0xff] %v756_v7 }
  0x21 PF: > { %p757_p10 = scmp.ge.s32.totalorder %s907_s24, 1  ;;  %p322_p11 = scmp.lt.s32.totalorder %s907_s24, 5 }
  0x23   : > { %p323_p12 = pnand %p757_p10, %p322_p11 }
  0x24   : > { %s329_s7 = sand.u32 (!%p323_p12), 1, %s899_s22   ;;  %s777_s11 = sshll.u32 (!%p323_p12), %s742_s25, 5 }
  0x25   : > { %326 = sbr.rel (%p323_p12) target bundleno = 244 (0xf4), region = 112  ;;  %s1025_s16 = sshll.u32 (!%p323_p12), %s329_s7, 5 }
  0x26   : > { %s1034_s26 = scalar_lea.vmem (!%p323_p12), [#allocation3], %s1025_s16  ;;  %s331_s28 = scalar_lea.vmem (!%p323_p12), [#allocation2], %s1025_s16 }
  0x27   : > { %s651_s14 = scalar_lea.hbm (!%p323_p12), %s1196_s6, %s777_s11  ;;  %s865_s20 = scalar_lea.hbm (!%p323_p12), %s1196_s6, 128 }
  0x28   : > { %s654_s25 = sshll.u32 (!%p323_p12), %s651_s14, 4  ;;  %s655_s25 = int_to_ptr.hbm [resolvable:$true] %s654_s25 }
  0x29   : > { %s859_s17 = sshra.s32 (!%p323_p12), %s655_s25, 4  ;;  %s860_s17 = int_to_ptr.hbm [resolvable:$true] %s859_s17 }
  0x2a   : > { %v524_v8 = vld [vmem:[%s1193_s3 + $0x38] sm:$0xff]  ;;  %v523_v10 = vld [vmem:[%s1193_s3 + $0x30] sm:$0xff]  ;;  %vm380_vm0 = vcmask 523264   ;;  %v522_v12 = vld [vmem:[%s1193_s3 + $0x28] sm:$0xff]  ;;  %s861_s18 = scalar_lea.hbm %s860_s17, 32  ;;  %p866_p2 = scmp.lt.s32.totalorder %s860_s17, %s1196_s6 }
  0x2b   : > { %v516_v9 = vld [vmem:[%s1192_s2 + $0x38] sm:$0xff]  ;;  %545 = vmatpush.msra.mxu0 %v524_v8  ;;  %v515_v11 = vld [vmem:[%s1192_s2 + $0x30] sm:$0xff]  ;;  %778 = vmatpush.msra.mxu2 %v524_v8  ;;  %v1037_v13 = vld [vmem:[%s1034_s26] sm:$0xff]  ;;  %p862_p13 = scmp.ne.s32.totalorder %s860_s17, %s861_s18  ;;  %p867_p3 = scmp.lt.s32.totalorder %s865_s20, %s861_s18 }
  0x2c   : > { %586 = vmatpush.msra.mxu1 %v516_v9  ;;  %786 = vmatpush.msra.mxu3 %v516_v9  ;;  %v393_v14 = vsel %vm380_vm0, %v1037_v13, 0.0  ;;  %v1042_v15 = vld [vmem:[%s331_s28 + $0x10] sm:$0xff]  ;;  %v372_v16 = vld [vmem:[%s331_s28] sm:$0xff]  ;;  %v514_v17 = vld [vmem:[%s1192_s2 + $0x28] sm:$0xff]  ;;  %v429_v50 = vmul.f32 %v1037_v13, %v1037_v13 }
  0x2d   : > { %546 = vmatpush.msra.mxu0 %v523_v10  ;;  %779 = vmatpush.msra.mxu2 %v523_v10  ;;  %v387_v18 = vsel %vm380_vm0, %v1042_v15, 0.0  ;;  %v381_v19 = vsel %vm380_vm0, %v372_v16, 0.0  ;;  %v521_v20 = vld [vmem:[%s1193_s3 + $0x20] sm:$0xff]  ;;  %v1057_v22 = vld [vmem:[%s1034_s26 + $0x8] sm:$0xff]  ;;  %v1059_v23 = vld [vmem:[%s331_s28 + $0x18] sm:$0xff]  ;;  %v413_v34 = vmul.f32 %v372_v16, %v372_v16  ;;  %v415_v43 = vmul.f32 %v1042_v15, %v1042_v15  ;;  %p863_p0 = pnand %p862_p13, %p988_p6  ;;  %p868_p4 = por %p867_p3, %p866_p2 }
  0x2e   : > { %587 = vmatpush.msra.mxu1 %v515_v11  ;;  %787 = vmatpush.msra.mxu3 %v515_v11  ;;  %v513_v21 = vld [vmem:[%s1192_s2 + $0x20] sm:$0xff]  ;;  %v520_v24 = vld [vmem:[%s1193_s3 + $0x18] sm:$0xff]  ;;  %v373_v25 = vld [vmem:[%s331_s28 + $0x8] sm:$0xff]  ;;  %v396_v28 = vsel %vm380_vm0, %v1057_v22, 0.0  ;;  %v390_v30 = vsel %vm380_vm0, %v1059_v23, 0.0  ;;  %v416_v42 = vmul.f32 %v1059_v23, %v1059_v23  ;;  %v430_v49 = vmul.f32 %v1057_v22, %v1057_v22  ;;  %s368_s28 = scalar_lea.vmem [#allocation4], %s1025_s16 }
  0x2f   : > { %394 = vadd.xlane.f32.xlu2 %v393_v14  ;;  %547 = vmatpush.msra.mxu0 %v522_v12  ;;  %v512_v26 = vld [vmem:[%s1192_s2 + $0x18] sm:$0xff]  ;;  %v519_v27 = vld [vmem:[%s1193_s3 + $0x10] sm:$0xff]  ;;  %v384_v31 = vsel %vm380_vm0, %v373_v25, 0.0  ;;  %v518_v32 = vld [vmem:[%s1193_s3 + $0x8] sm:$0xff]  ;;  %v417_v39 = vsel %vm380_vm0, %v413_v34, 0.0  ;;  %v414_v44 = vmul.f32 %v373_v25, %v373_v25  ;;  %v423_v46 = vsel %vm380_vm0, %v415_v43, 0.0  ;;  %p864_p1 = pneg %p863_p0 }
  0x30   : > { %388 = vadd.xlane.f32.xlu1 %v387_v18  ;;  %382 = vadd.xlane.f32.xlu0 %v381_v19  ;;  %v511_v29 = vld [vmem:[%s1192_s2 + $0x10] sm:$0xff]  ;;  %v510_v33 = vld [vmem:[%s1192_s2 + $0x8] sm:$0xff]  ;;  %v517_v35 = vld [vmem:[%s1193_s3] sm:$0xff]  ;;  %v426_v45 = vsel %vm380_vm0, %v416_v42, 0.0  ;;  %v436_v52 = vsel %vm380_vm0, %v430_v49, 0.0  ;;  %v433_v53 = vsel %vm380_vm0, %v429_v50, 0.0 }
  0x31   : > { %588 = vmatpush.msra.mxu1 %v514_v17  ;;  %780 = vmatpush.msra.mxu2 %v522_v12  ;;  %v509_v36 = vld [vmem:[%s1192_s2] sm:$0xff]  ;;  %v379_v37 = vld [vmem:[%s1034_s26 + $0x18] sm:$0xff]  ;;  %v378_v38 = vld [vmem:[%s1034_s26 + $0x10] sm:$0xff]  ;;  %v420_v47 = vsel %vm380_vm0, %v414_v44, 0.0  ;;  %s652_s15 = sshll.u32 %s368_s28, 4  ;;  %s640_s16 = scalar_lea.sflag [#allocation5], %s329_s7  ;;  %s653_s15 = int_to_ptr.vmem [resolvable:$true] %s652_s15 }
  0x32   : > { %548 = vmatpush.msra.mxu0 %v521_v20  ;;  %788 = vmatpush.msra.mxu3 %v514_v17  ;;  %v402_v40 = vsel %vm380_vm0, %v379_v37, 0.0  ;;  %v399_v41 = vsel %vm380_vm0, %v378_v38, 0.0  ;;  %v431_v48 = vmul.f32 %v378_v38, %v378_v38  ;;  %v432_v54 = vmul.f32 %v379_v37, %v379_v37  ;;  %p869_p5 = pnand %p868_p4, %p864_p1 }
  0x33   : > { %589 = vmatpush.msra.mxu1 %v513_v21  ;;  %781 = vmatpush.msra.mxu2 %v521_v20 }
  0x34   : > { %549 = vmatpush.msra.mxu0 %v520_v24  ;;  %789 = vmatpush.msra.mxu3 %v513_v21  ;;  %v439_v51 = vsel %vm380_vm0, %v431_v48, 0.0  ;;  %v442_v55 = vsel %vm380_vm0, %v432_v54, 0.0 }
  0x35   : > { %590 = vmatpush.msra.mxu1 %v512_v26  ;;  %782 = vmatpush.msra.mxu2 %v520_v24 }
  0x36   : > { %550 = vmatpush.msra.mxu0 %v519_v27  ;;  %790 = vmatpush.msra.mxu3 %v512_v26 }
  0x37   : > { %397 = vadd.xlane.f32.xlu2 %v396_v28  ;;  %591 = vmatpush.msra.mxu1 %v511_v29 }
  0x38   : > { %391 = vadd.xlane.f32.xlu1 %v390_v30  ;;  %385 = vadd.xlane.f32.xlu0 %v384_v31 }
  0x39   : > { %783 = vmatpush.msra.mxu2 %v519_v27  ;;  %551 = vmatpush.msra.mxu0 %v518_v32 }
  0x3a   : > { %791 = vmatpush.msra.mxu3 %v511_v29  ;;  %592 = vmatpush.msra.mxu1 %v510_v33 }
  0x3b   : > { %784 = vmatpush.msra.mxu2 %v518_v32  ;;  %552 = vmatpush.msra.mxu0 %v517_v35 }
  0x3c   : > { %792 = vmatpush.msra.mxu3 %v510_v33  ;;  %593 = vmatpush.msra.mxu1 %v509_v36 }
  0x3d   : > { %761 = vmatmul.msk.f32.vlgmr.msra.gmra.mxu0 %vm380_vm0, %v1037_v13  ;;  %765 = vmatmul.msk.f32.vlgmr.msra.gmra.mxu1 %vm380_vm0, %v372_v16 }
  0x3e   : > { %785 = vmatpush.msra.mxu2 %v517_v35  ;;  %793 = vmatpush.msra.mxu3 %v509_v36 }
  0x3f   : > { %418 = vadd.xlane.f32.xlu2 %v417_v39  ;;  %763 = vmatmul.msk.f32.vlgmr.msra.gmra.mxu2 %vm380_vm0, %v378_v38 }
  0x40   : > { %403 = vadd.xlane.f32.xlu1 %v402_v40  ;;  %400 = vadd.xlane.f32.xlu0 %v399_v41 }
  0x41   : > { %767 = vmatmul.msk.f32.vlgmr.msra.gmra.mxu3 %vm380_vm0, %v1042_v15 }
  0x45   : > { %762 = vmatmul.msk.f32.gmra.mxu0 %vm380_vm0, %v1057_v22  ;;  %766 = vmatmul.msk.f32.gmra.mxu1 %vm380_vm0, %v373_v25 }
  0x47   : > { %427 = vadd.xlane.f32.xlu2 %v426_v45  ;;  %764 = vmatmul.msk.f32.gmra.mxu2 %vm380_vm0, %v379_v37 }
  0x48   : > { %424 = vadd.xlane.f32.xlu1 %v423_v46  ;;  %421 = vadd.xlane.f32.xlu0 %v420_v47 }
  0x49   : > { %768 = vmatmul.msk.f32.gmra.mxu3 %vm380_vm0, %v1059_v23 }
  0x4f   : > { %440 = vadd.xlane.f32.xlu2 %v439_v51 }
  0x50   : > { %437 = vadd.xlane.f32.xlu1 %v436_v52  ;;  %434 = vadd.xlane.f32.xlu0 %v433_v53 }
  0x58   : > { %443 = vadd.xlane.f32.xlu0 %v442_v55 }
  0xa2   : > { %v395_v56 = vpop.xlane.xlu2 %394 }
  0xa3   : > { %v389_v57 = vpop.xlane.xlu1 %388  ;;  %v383_v58 = vpop.xlane.xlu0 %382 }
  0xa4   : > { %v405_v4 = vadd.f32 %v395_v56, %v383_v58 }
  0xa6   : > { %v1122_v7 = vmul.f32 0.0078125, %v405_v4 }
  0xa8   : > { %v453_v16 = vmul.f32 %v1122_v7, %v1122_v7 }
  0xaa   : > { %v398_v59 = vpop.xlane.xlu2 %397 }
  0xab   : > { %v392_v60 = vpop.xlane.xlu1 %391  ;;  %v386_v61 = vpop.xlane.xlu0 %385 }
  0xac   : > { %v406_v6 = vadd.f32 %v398_v59, %v386_v61 }
  0xae   : > { %v1126_v9 = vmul.f32 0.0078125, %v406_v6 }
  0xb0   : > { %v454_v19 = vmul.f32 %v1126_v9, %v1126_v9 }
  0xb2   : > { %v419_v62 = vpop.xlane.xlu2 %418 }
  0xb3   : > { %v404_v63 = vpop.xlane.xlu1 %403  ;;  %v401_v0 = vpop.xlane.xlu0 %400 }
  0xb4   : > { %v407_v5 = vadd.f32 %v401_v0, %v389_v57  ;;  %v408_v20 = vadd.f32 %v404_v63, %v392_v60  ;;  %v835_v0 = vld [vmem:[%s1194_s4] ss:$0 sm:$0xff] }
  0xb6   : > { %v1124_v8 = vmul.f32 0.0078125, %v407_v5  ;;  %v1134_v27 = vmul.f32 0.0078125, %v408_v20 }
  0xb8   : > { %v455_v17 = vmul.f32 %v1124_v8, %v1124_v8  ;;  %v456_v35 = vmul.f32 %v1134_v27, %v1134_v27 }
  0xba   : > { %v428_v1 = vpop.xlane.xlu2 %427  ;;  %v554_v38 = vpop.f32.mrf.mxu0 }
  0xbb   : > { %v425_v2 = vpop.xlane.xlu1 %424  ;;  %v422_v3 = vpop.xlane.xlu0 %421 }
  0xbc   : > { %v595_v39 = vpop.f32.mrf.mxu1 }
  0xc2   : > { %v441_v10 = vpop.xlane.xlu2 %440  ;;  %v560_v52 = vpop.f32.mrf.mxu2 }
  0xc3   : > { %v438_v11 = vpop.xlane.xlu1 %437  ;;  %v447_v12 = vadd.f32 %v441_v10, %v425_v2  ;;  %v435_v13 = vpop.xlane.xlu0 %434  ;;  %v596_v10 = vadd.f32 %v595_v39, %v554_v38 }
  0xc4   : > { %v446_v14 = vadd.f32 %v438_v11, %v422_v3  ;;  %v445_v15 = vadd.f32 %v435_v13, %v419_v62  ;;  %v601_v54 = vpop.f32.mrf.mxu3  ;;  %v557_v57 = vpop.f32.mrf.mxu0 }
  0xc5   : > { %v451_v18 = vmul.f32 0.0078125, %v447_v12  ;;  %v598_v59 = vpop.f32.mrf.mxu1  ;;  %v602_v2 = vadd.f32 %v601_v54, %v560_v52 }
  0xc6   : > { %v450_v21 = vmul.f32 0.0078125, %v446_v14  ;;  %v449_v22 = vmul.f32 0.0078125, %v445_v15  ;;  %v599_v4 = vadd.f32 %v598_v59, %v557_v57 }
  0xc7   : > { %v459_v23 = vsub.f32 %v451_v18, %v455_v17 }
  0xc8   : > { %v458_v24 = vsub.f32 %v450_v21, %v454_v19  ;;  %v457_v25 = vsub.f32 %v449_v22, %v453_v16  ;;  %v836_v16 = vld [vmem:[%s1195_s5] ss:$0 sm:$0xff] }
  0xc9   : > { %v463_v26 = vmax.f32 %v459_v23, 0.0 }
  0xca   : > { %v462_v28 = vmax.f32 %v458_v24, 0.0  ;;  %v461_v29 = vmax.f32 %v457_v25, 0.0  ;;  %v563_v24 = vpop.f32.mrf.mxu2 }
  0xcb   : > { %v467_v30 = vadd.f32 1e-05, %v463_v26  ;;  %v444_v31 = vpop.xlane.xlu0 %443 }
  0xcc   : > { %v466_v32 = vadd.f32 1e-05, %v462_v28  ;;  %v465_v33 = vadd.f32 1e-05, %v461_v29  ;;  %v448_v34 = vadd.f32 %v444_v31, %v428_v1 }
  0xcd   : > { %837 = vrsqrt.f32 %v467_v30  ;;  %vm495_vm4 = vweird.f32 %v467_v30 }
  0xce   : > { %839 = vrsqrt.f32 %v466_v32  ;;  %v452_v36 = vmul.f32 0.0078125, %v448_v34  ;;  %vm485_vm5 = vweird.f32 %v466_v32  ;;  %vm475_vm7 = vweird.f32 %v465_v33 }
  0xcf   : > { %841 = vrsqrt.f32 %v465_v33 }
  0xd0   : > { %v460_v37 = vsub.f32 %v452_v36, %v456_v35 }
  0xd2   : > { %v464_v40 = vmax.f32 %v460_v37, 0.0 }
  0xd3   : > { %v838_v41 = vpop.eup %837 }
  0xd4   : > { %v840_v42 = vpop.eup %839  ;;  %v490_v43 = vmul.f32 %v838_v41, %v467_v30  ;;  %v1138_v44 = vadd.f32 1e-05, %v464_v40  ;;  %vm496_vm1 = vweird.f32 %v838_v41 }
  0xd5   : > { %v842_v45 = vpop.eup %841  ;;  %v480_v46 = vmul.f32 %v840_v42, %v466_v32  ;;  %vm486_vm2 = vweird.f32 %v840_v42  ;;  %vm497_vm6 = vmor %vm495_vm4, %vm496_vm1 }
  0xd6   : > { %v491_v47 = vmul.f32 %v838_v41, %v490_v43  ;;  %v470_v48 = vmul.f32 %v842_v45, %v465_v33  ;;  %843 = vrsqrt.f32 %v1138_v44  ;;  %vm476_vm3 = vweird.f32 %v842_v45  ;;  %vm487_vm8 = vmor %vm485_vm5, %vm486_vm2 }
  0xd7   : > { %v481_v49 = vmul.f32 %v840_v42, %v480_v46  ;;  %vm477_vm9 = vmor %vm475_vm7, %vm476_vm3  ;;  %vm505_vm11 = vweird.f32 %v1138_v44 }
  0xd8   : > { %v471_v50 = vmul.f32 %v842_v45, %v470_v48  ;;  %v492_v51 = vmul.f32 0.5, %v491_v47 }
  0xd9   : > { %v482_v53 = vmul.f32 0.5, %v481_v49 }
  0xda   : > { %v472_v55 = vmul.f32 0.5, %v471_v50  ;;  %v493_v56 = vsub.f32 1.5, %v492_v51 }
  0xdb   : > { %v483_v58 = vsub.f32 1.5, %v482_v53 }
  0xdc   : > { %v844_v60 = vpop.eup %843  ;;  %v473_v61 = vsub.f32 1.5, %v472_v55  ;;  %v494_v62 = vmul.f32 %v838_v41, %v493_v56 }
  0xdd   : > { %v500_v63 = vmul.f32 %v844_v60, %v1138_v44  ;;  %v484_v1 = vmul.f32 %v840_v42, %v483_v58  ;;  %vm506_vm10 = vweird.f32 %v844_v60 }
  0xde   : > { %v474_v3 = vmul.f32 %v842_v45, %v473_v61  ;;  %v498_v5 = vsel %vm497_vm6, %v838_v41, %v494_v62  ;;  %vm507_vm12 = vmor %vm505_vm11, %vm506_vm10 }
  0xdf   : > { %v501_v6 = vmul.f32 %v844_v60, %v500_v63  ;;  %v488_v11 = vsel %vm487_vm8, %v840_v42, %v484_v1  ;;  %v613_v12 = vmul.f32 %v498_v5, %v1124_v8  ;;  %v609_v17 = vmul.f32 %v602_v2, %v498_v5 }
  0xe0   : > { %v478_v13 = vsel %vm477_vm9, %v842_v45, %v474_v3  ;;  %v612_v14 = vmul.f32 %v488_v11, %v1126_v9  ;;  %v608_v20 = vmul.f32 %v599_v4, %v488_v11  ;;  %v604_v9 = vpop.f32.mrf.mxu3 }
  0xe1   : > { %v611_v15 = vmul.f32 %v478_v13, %v1122_v7  ;;  %v621_v18 = vmul.f32 %v835_v0, %v613_v12  ;;  %v502_v19 = vmul.f32 0.5, %v501_v6  ;;  %v607_v22 = vmul.f32 %v596_v10, %v478_v13 }
  0xe2   : > { %v620_v21 = vmul.f32 %v835_v0, %v612_v14  ;;  %v605_v31 = vadd.f32 %v604_v9, %v563_v24 }
  0xe3   : > { %v619_v23 = vmul.f32 %v835_v0, %v611_v15  ;;  %v625_v8 = vsub.f32 %v609_v17, %v621_v18  ;;  %v503_v25 = vsub.f32 1.5, %v502_v19 }
  0xe4   : > { %v624_v26 = vsub.f32 %v608_v20, %v620_v21 }
  0xe5   : > { %v623_v7 = vsub.f32 %v607_v22, %v619_v23  ;;  %v633_v28 = vadd.f32 %v836_v16, %v625_v8  ;;  %v504_v29 = vmul.f32 %v844_v60, %v503_v25 }
  0xe6   : > { %v632_v30 = vadd.f32 %v836_v16, %v624_v26 }
  0xe7   : > { %v631_v32 = vadd.f32 %v836_v16, %v623_v7  ;;  %637 = vst [vmem:[%s368_s28 + $0x10] sm:$0xff] %v633_v28  ;;  %v508_v33 = vsel %vm507_vm12, %v844_v60, %v504_v29 }
  0xe8   : > { %636 = vst [vmem:[%s368_s28 + $0x8] sm:$0xff] %v632_v30  ;;  %v614_v34 = vmul.f32 %v508_v33, %v1134_v27  ;;  %v610_v35 = vmul.f32 %v605_v31, %v508_v33 }
  0xe9   : > { %635 = vst [vmem:[%s368_s28] sm:$0xff] %v631_v32 }
  0xea   : > { %v622_v36 = vmul.f32 %v835_v0, %v614_v34 }
  0xec   : > { %v626_v37 = vsub.f32 %v610_v35, %v622_v36 }
  0xee   : > { %v634_v38 = vadd.f32 %v836_v16, %v626_v37 }
  0xf0   : > { %638 = vst [vmem:[%s368_s28 + $0x18] sm:$0xff] %v634_v38 }
  0xf1   : > { %872 = shalt.err (!%p869_p5)
}
  0xf2   : > { %s909_s7 = smov 128   ;;  %s910_s11 = smov 8  }
  0xf3   : > { %794 = dma.vmem_to_hbm [thread:$0]  (%p988_p6), %s653_s15, 512, %s655_s25, %s640_s16, %s909_s7, %s909_s7, %s910_s11  }
  0xf4 PF: > { %p800_p7 = scmp.ge.s32.totalorder %s907_s24, 2  ;;  %s669_s28 = sand.u32 1, %s895_s21  }
  0xf5   : > { %s670_s12 = scalar_lea.sflag [#allocation5], %s669_s28 }
  0xf6   : > { %p797_p9 = pnand %p800_p7, %p992_p8 }
  0xf8   : > { %p798_p10 = pneg %p797_p9 }
  0xfa   : > { %890 = dma.done.wait (%p798_p10), %s670_s12, 512  }
  0xfb   : > { %892 = vsyncadd (%p798_p10), %s670_s12, 4294966784  ;;  %p16_p11 = scmp.ge.s32.totalorder %s969_s27, 6   ;;  %s1200_s21 = smov %s899_s22 }
  0xfc   : > { %s1201_s22 = smov %s903_s23  ;;  %s1202_s23 = smov %s982_s30 }
  0xfd   : > { %s1203_s24 = smov %s969_s27  ;;  %18 = sbr.rel (!%p16_p11) target bundleno = 3 (0x3), region = 168 }
 0x102   :  { %676 = vsyncpa [#allocation5], 1 }
 0x103   :  { %678 = vsyncpa [#allocation5 + $0x1], 1 }

</bundles_post_ra>
